<compile_context>
chip_gen: v5e
topology: v5e:2x2
jax: 0.10.0
libtpu: 0.0.40
codegen_flags: <defaults>
</compile_context>

<pallas_src>
import functools

import jax
import jax.numpy as jnp
from jax.experimental import pallas as pl
from jax.experimental.pallas import tpu as pltpu


def _round_up(x, m):
    return ((x + m - 1) // m) * m


# ----------------------------------------------------------------------------
# Kernel: T LSTM decoder steps in one invocation
# ----------------------------------------------------------------------------
def decoder_kernel(T,                   # static number of real steps (<= TP)
                   locs_ref,            # (TP, 1) int32  token ids (rows >= T are 0, unused)
                   emb_ref,             # (L, H)  embedding table (VMEM-resident)
                   h0_ref, c0_ref,      # (1, H)  initial LSTM state
                   w_g_ref,             # (2H, 4*GP) fused [W_ih^T ; W_hh^T], gate blocks 128-lane padded
                   b_g_ref,             # (1, 4*GP)  fused bias (bias_ih + bias_hh)
                   w_fc_ref,            # (H, LP)    fc weight^T, padded cols zero
                   b_fc_ref,            # (1, LP)    fc bias, padded lanes = -1e30 (f32 only!)
                   score_ref,           # (TP, LP)   lane-dense log-prob slab
                   h_ref, c_ref,        # (1, H)     final state outputs
                   hbuf_ref):           # (TP, H)    VMEM scratch: per-step hidden rows
    H = h0_ref.shape[-1]
    GP = b_g_ref.shape[-1] // 4
    TP = score_ref.shape[0]
    L_vocab = emb_ref.shape[0]

    # Embedding gather for ALL steps: one-hot @ table on the MXU.
    locs = locs_ref[...]                                              # (TP, 1)
    onehot = (locs == jax.lax.broadcasted_iota(jnp.int32, (TP, L_vocab), 1)
              ).astype(jnp.float32)                                   # (TP, L)
    x_all = jnp.dot(onehot, emb_ref[...],
                    preferred_element_type=jnp.float32)               # (TP, H)

    # Hoisted input projection: x_t @ W_ih^T (+ fused bias) for all steps at once.
    xproj = jnp.dot(x_all, w_g_ref[:H, :],
                    preferred_element_type=jnp.float32) + b_g_ref[...]  # (TP, 4*GP)

    w_hh = w_g_ref[H:2 * H, :]                                        # (H, 4*GP), hoisted load

    hbuf_ref[...] = jnp.zeros_like(hbuf_ref)

    h = h0_ref[...]                                                   # (1, H)
    c = c0_ref[...]                                                   # (1, H)
    for t in range(T):  # static, fully unrolled recurrence (T is small)
        # Single MXU matmul on the serial h->h critical path.
        gates = xproj[t:t + 1, :] + jnp.dot(h, w_hh,
                                            preferred_element_type=jnp.float32)  # (1, 4*GP)
        # PyTorch gate order [i, f, g, o]; each block starts at a 128-lane boundary.
        i_g = jax.nn.sigmoid(gates[:, 0 * GP:0 * GP + H])
        f_g = jax.nn.sigmoid(gates[:, 1 * GP:1 * GP + H])
        g_g = jnp.tanh(gates[:, 2 * GP:2 * GP + H])
        o_g = jax.nn.sigmoid(gates[:, 3 * GP:3 * GP + H])
        c = f_g * c + i_g * g_g
        h = o_g * jnp.tanh(c)
        hbuf_ref[pl.ds(t, 1), :] = h                                  # static sublane store

    # TODO(synk): training-mode dropout (nn.Dropout) omitted; eval mode == identity.

    # Batched fc projection + numerically-stable log_softmax over the padded
    # 128-lane row (padded logits are -1e30: never win the max, exp -> 0).
    h_all = hbuf_ref[...]                                             # (TP, H)
    y = jnp.dot(h_all, w_fc_ref[...],
                preferred_element_type=jnp.float32) + b_fc_ref[...]   # (TP, LP)
    m = jnp.max(y, axis=-1, keepdims=True)
    z = y - m
    lse = jnp.log(jnp.sum(jnp.exp(z), axis=-1, keepdims=True))
    score_ref[...] = z - lse                                          # single lane-dense store

    h_ref[...] = h
    c_ref[...] = c


# ----------------------------------------------------------------------------
# Wrappers
# ----------------------------------------------------------------------------
@jax.jit
def decoder_decode(locs, h2, c2, embedding, w_g, b_g, w_fc, b_fc):
    """Decode T steps (token ids `locs`) in a single pallas_call.

    locs: (T,) int32; h2, c2: (1, 1, H).
    Returns (log_probs (T, L), (h2', c2') each (1, 1, H)).
    """
    T = locs.shape[0]
    L, H = embedding.shape
    GP = b_g.shape[-1] // 4
    LP = b_fc.shape[-1]
    TP = _round_up(max(T, 1), 8)      # sublane-pad the step axis

    locs_p = jnp.zeros((TP, 1), jnp.int32).at[:T, 0].set(locs.astype(jnp.int32))
    h0 = h2.reshape(1, H).astype(jnp.float32)
    c0 = c2.reshape(1, H).astype(jnp.float32)

    kernel = functools.partial(decoder_kernel, T)

    scores, h_new, c_new = pl.pallas_call(
        kernel,
        out_shape=(
            jax.ShapeDtypeStruct((TP, LP), jnp.float32),
            jax.ShapeDtypeStruct((1, H), jnp.float32),
            jax.ShapeDtypeStruct((1, H), jnp.float32),
        ),
        grid=(1,),
        in_specs=[
            pl.BlockSpec((TP, 1), lambda i: (0, 0)),            # token ids
            pl.BlockSpec((L, H), lambda i: (0, 0)),             # embedding table (VMEM)
            pl.BlockSpec((1, H), lambda i: (0, 0)),             # h0
            pl.BlockSpec((1, H), lambda i: (0, 0)),             # c0
            pl.BlockSpec((2 * H, 4 * GP), lambda i: (0, 0)),    # fused gate weight
            pl.BlockSpec((1, 4 * GP), lambda i: (0, 0)),        # fused gate bias
            pl.BlockSpec((H, LP), lambda i: (0, 0)),            # fc weight
            pl.BlockSpec((1, LP), lambda i: (0, 0)),            # fc bias
        ],
        out_specs=(
            pl.BlockSpec((TP, LP), lambda i: (0, 0)),           # log-prob slab
            pl.BlockSpec((1, H), lambda i: (0, 0)),             # final hidden
            pl.BlockSpec((1, H), lambda i: (0, 0)),             # final cell
        ),
        scratch_shapes=[pltpu.VMEM((TP, H), jnp.float32)],
        compiler_params=pltpu.CompilerParams(dimension_semantics=("arbitrary",)),
    )(locs_p, embedding, h0, c0, w_g, b_g, w_fc, b_fc)

    return scores[:T, :L], (h_new.reshape(1, 1, H), c_new.reshape(1, 1, H))


def decoder_forward(loc, h2, c2, packed):
    """Mirrors DecoderModel1.forward: one decode step (T=1)."""
    locs = jnp.reshape(loc, (1,)).astype(jnp.int32)
    score, state = decoder_decode(locs, h2, c2, packed['embedding'],
                                  packed['w_g'], packed['b_g'],
                                  packed['w_fc'], packed['b_fc'])
    return score, state      # score: (1, loc_size)


# ----------------------------------------------------------------------------
# Parameters (natural PyTorch layout) + one-time repack into kernel layout
# ----------------------------------------------------------------------------
def make_params(key, hidden_size, loc_size):
    """Natural-layout parameters mimicking the module's init_weights()."""
    H, L = hidden_size, loc_size
    k_emb, k_ih, k_hh, k_fcw = jax.random.split(key, 4)

    embedding = jax.random.normal(k_emb, (L, H), dtype=jnp.float32)   # nn.Embedding default N(0,1)

    limit = (6.0 / (4 * H + H)) ** 0.5                                # xavier_uniform_ on weight_ih
    w_ih = jax.random.uniform(k_ih, (4 * H, H), minval=-limit, maxval=limit, dtype=jnp.float32)

    a = jax.random.normal(k_hh, (4 * H, H), dtype=jnp.float32)        # orthogonal_ on weight_hh
    q, r = jnp.linalg.qr(a)
    w_hh = q * jnp.sign(jnp.diagonal(r))[None, :]

    # init_weights(): every parameter whose name contains 'bias' is zeroed.
    b_ih = jnp.zeros((4 * H,), jnp.float32)
    b_hh = jnp.zeros((4 * H,), jnp.float32)
    b_fc = jnp.zeros((L,), jnp.float32)

    bound = 1.0 / (H ** 0.5)                                          # nn.Linear default weight init
    w_fc = jax.random.uniform(k_fcw, (L, H), minval=-bound, maxval=bound, dtype=jnp.float32)

    return dict(embedding=embedding, w_ih=w_ih, w_hh=w_hh,
                b_ih=b_ih, b_hh=b_hh, w_fc=w_fc, b_fc=b_fc)


def pack_params(nat):
    """One-time repack of PyTorch-layout weights into the kernel layout.

    - LSTM weights pre-transposed to (in, out) and fused into one (2H, 4*GP)
      array [W_ih^T ; W_hh^T] whose four gate blocks are zero-padded to GP=128
      lanes each (vreg-aligned in-kernel gate slices).
    - fc weight pre-transposed to (H, LP), LP a multiple of 128; padded bias
      lanes are -1e30 (must stay f32) so log_softmax over the padded row is
      unchanged.
    """
    H = nat['w_ih'].shape[1]
    L = nat['w_fc'].shape[0]
    GP = max(128, _round_up(H, 128))
    LP = max(128, _round_up(L, 128))

    w_fused = jnp.concatenate([nat['w_ih'].T, nat['w_hh'].T], axis=0)   # (2H, 4H), gate order [i,f,g,o]
    b_fused = (nat['b_ih'] + nat['b_hh']).reshape(1, 4 * H)

    w_g = jnp.zeros((2 * H, 4 * GP), jnp.float32)
    b_g = jnp.zeros((1, 4 * GP), jnp.float32)
    for g in range(4):
        w_g = w_g.at[:, g * GP:g * GP + H].set(w_fused[:, g * H:(g + 1) * H])
        b_g = b_g.at[:, g * GP:g * GP + H].set(b_fused[:, g * H:(g + 1) * H])

    w_fc = jnp.zeros((H, LP), jnp.float32).at[:, :L].set(nat['w_fc'].T)
    b_fc = jnp.full((1, LP), -1e30, jnp.float32).at[:, :L].set(nat['b_fc'].reshape(1, L))

    return dict(embedding=nat['embedding'], w_g=w_g, b_g=b_g, w_fc=w_fc, b_fc=b_fc)


# ----------------------------------------------------------------------------
# Pure-JAX reference (natural weights) for correctness checks
# ----------------------------------------------------------------------------
def reference_forward(loc, h2, c2, nat):
    H = nat['w_ih'].shape[1]
    x = nat['embedding'][loc].reshape(1, H)
    h = h2.reshape(1, H)
    c = c2.reshape(1, H)
    gates = x @ nat['w_ih'].T + h @ nat['w_hh'].T + nat['b_ih'] + nat['b_hh']
    i = jax.nn.sigmoid(gates[:, 0:H])
    f = jax.nn.sigmoid(gates[:, H:2 * H])
    g = jnp.tanh(gates[:, 2 * H:3 * H])
    o = jax.nn.sigmoid(gates[:, 3 * H:4 * H])
    c_new = f * c + i * g
    h_new = o * jnp.tanh(c_new)
    y = h_new @ nat['w_fc'].T + nat['b_fc']
    score = jax.nn.log_softmax(y, axis=1)
    return score, (h_new.reshape(1, 1, H), c_new.reshape(1, 1, H))


if __name__ == "__main__":
    HIDDEN = 32     # parameters.hidden_size
    LOC_SIZE = 64   # parameters.loc_size
    T = 6           # decode length for the fused multi-step path

    key = jax.random.PRNGKey(0)
    k_p, k_h, k_c, k_l = jax.random.split(key, 4)
    nat = make_params(k_p, HIDDEN, LOC_SIZE)
    packed = pack_params(nat)           # one-time repack; no per-step transposes

    h2 = jax.random.normal(k_h, (1, 1, HIDDEN), dtype=jnp.float32)    # (layers, batch, H)
    c2 = jax.random.normal(k_c, (1, 1, HIDDEN), dtype=jnp.float32)

    # --- single step: matches DecoderModel1.forward(loc, h2, c2) ---
    loc = jnp.array(5, dtype=jnp.int32)
    score, (h2_new, c2_new) = decoder_forward(loc, h2, c2, packed)
    jax.block_until_ready((score, h2_new, c2_new))

    ref_score, (ref_h, ref_c) = reference_forward(loc, h2, c2, nat)
    assert jnp.allclose(score, ref_score, atol=1e-3, rtol=1e-3), "score mismatch"
    assert jnp.allclose(h2_new, ref_h, atol=1e-3, rtol=1e-3), "h2 mismatch"
    assert jnp.allclose(c2_new, ref_c, atol=1e-3, rtol=1e-3), "c2 mismatch"

    # --- T decode steps fused into one kernel invocation ---
    locs = jax.random.randint(k_l, (T,), 0, LOC_SIZE, dtype=jnp.int32)
    scores, (hT, cT) = decoder_decode(locs, h2, c2, packed['embedding'],
                                      packed['w_g'], packed['b_g'],
                                      packed['w_fc'], packed['b_fc'])
    jax.block_until_ready((scores, hT, cT))

    rh, rc = h2, c2
    ref_rows = []
    for t in range(T):
        s_t, (rh, rc) = reference_forward(locs[t], rh, rc, nat)
        ref_rows.append(s_t)
    ref_scores = jnp.concatenate(ref_rows, axis=0)
    assert jnp.allclose(scores, ref_scores, atol=1e-3, rtol=1e-3), "multi-step score mismatch"
    assert jnp.allclose(hT, rh, atol=1e-3, rtol=1e-3), "multi-step h mismatch"
    assert jnp.allclose(cT, rc, atol=1e-3, rtol=1e-3), "multi-step c mismatch"

    print("KERNEL_OK")
</pallas_src>

<mosaic_0001>
module attributes {stable_mosaic.version = 11 : i64} {
  func.func @decoder_kernel(%arg0: i32, %arg1: memref<8x1xi32, #tpu.memory_space<vmem>>, %arg2: memref<64x32xf32, #tpu.memory_space<vmem>>, %arg3: memref<1x32xf32, #tpu.memory_space<vmem>>, %arg4: memref<1x32xf32, #tpu.memory_space<vmem>>, %arg5: memref<64x512xf32, #tpu.memory_space<vmem>>, %arg6: memref<1x512xf32, #tpu.memory_space<vmem>>, %arg7: memref<32x128xf32, #tpu.memory_space<vmem>>, %arg8: memref<1x128xf32, #tpu.memory_space<vmem>>, %arg9: memref<8x128xf32, #tpu.memory_space<vmem>>, %arg10: memref<1x32xf32, #tpu.memory_space<vmem>>, %arg11: memref<1x32xf32, #tpu.memory_space<vmem>>, %arg12: memref<8x32xf32, #tpu.memory_space<vmem>>) attributes {dimension_semantics = [#tpu.dimension_semantics<arbitrary>], iteration_bounds = array<i64: 1>, scalar_prefetch = 0 : i64, scratch_operands = 1 : i64, tpu.core_type = #tpu.core_type<tc>, window_params = [{pipeline_mode = #tpu.pipeline_mode<synchronous>, transform_indices = @transform_0, window_bounds = array<i64: 8, 1>}, {pipeline_mode = #tpu.pipeline_mode<synchronous>, transform_indices = @transform_1, window_bounds = array<i64: 64, 32>}, {pipeline_mode = #tpu.pipeline_mode<synchronous>, transform_indices = @transform_2, window_bounds = array<i64: 1, 32>}, {pipeline_mode = #tpu.pipeline_mode<synchronous>, transform_indices = @transform_3, window_bounds = array<i64: 1, 32>}, {pipeline_mode = #tpu.pipeline_mode<synchronous>, transform_indices = @transform_4, window_bounds = array<i64: 64, 512>}, {pipeline_mode = #tpu.pipeline_mode<synchronous>, transform_indices = @transform_5, window_bounds = array<i64: 1, 512>}, {pipeline_mode = #tpu.pipeline_mode<synchronous>, transform_indices = @transform_6, window_bounds = array<i64: 32, 128>}, {pipeline_mode = #tpu.pipeline_mode<synchronous>, transform_indices = @transform_7, window_bounds = array<i64: 1, 128>}, {pipeline_mode = #tpu.pipeline_mode<synchronous>, transform_indices = @transform_8, window_bounds = array<i64: 8, 128>}, {pipeline_mode = #tpu.pipeline_mode<synchronous>, transform_indices = @transform_9, window_bounds = array<i64: 1, 32>}, {pipeline_mode = #tpu.pipeline_mode<synchronous>, transform_indices = @transform_10, window_bounds = array<i64: 1, 32>}]} {
    %c0 = arith.constant 0 : index
    %c0_0 = arith.constant 0 : index
    %0 = vector.load %arg1[%c0, %c0_0] : memref<8x1xi32, #tpu.memory_space<vmem>>, vector<8x1xi32>
    %1 = tpu.iota {dimensions = array<i32: 1>} : vector<8x64xi32>
    %2 = vector.broadcast %0 : vector<8x1xi32> to vector<8x64xi32>
    %3 = arith.cmpi eq, %2, %1 : vector<8x64xi32>
    %4 = arith.extui %3 : vector<8x64xi1> to vector<8x64xi32>
    %5 = arith.sitofp %4 : vector<8x64xi32> to vector<8x64xf32>
    %c0_1 = arith.constant 0 : index
    %c0_2 = arith.constant 0 : index
    %6 = vector.load %arg2[%c0_1, %c0_2] : memref<64x32xf32, #tpu.memory_space<vmem>>, vector<64x32xf32>
    %cst = arith.constant dense<0.000000e+00> : vector<8x32xf32>
    %7 = tpu.matmul %5, %6, %cst {dimension_numbers = #tpu.dot_dimension_numbers<[1], [0], [0], [1], [0, 0, 1, 1], [], []>} : vector<8x64xf32>, vector<64x32xf32>, vector<8x32xf32> -> vector<8x32xf32>
    %c0_3 = arith.constant 0 : index
    %c0_4 = arith.constant 0 : index
    %8 = vector.load %arg5[%c0_3, %c0_4] : memref<64x512xf32, #tpu.memory_space<vmem>>, vector<32x512xf32>
    %cst_5 = arith.constant dense<0.000000e+00> : vector<8x512xf32>
    %9 = tpu.matmul %7, %8, %cst_5 {dimension_numbers = #tpu.dot_dimension_numbers<[1], [0], [0], [1], [0, 0, 1, 1], [], []>} : vector<8x32xf32>, vector<32x512xf32>, vector<8x512xf32> -> vector<8x512xf32>
    %c0_6 = arith.constant 0 : index
    %c0_7 = arith.constant 0 : index
    %10 = vector.load %arg6[%c0_6, %c0_7] : memref<1x512xf32, #tpu.memory_space<vmem>>, vector<1x512xf32>
    %11 = vector.broadcast %10 : vector<1x512xf32> to vector<8x512xf32>
    %12 = arith.addf %9, %11 : vector<8x512xf32>
    %c32 = arith.constant 32 : index
    %c0_8 = arith.constant 0 : index
    %13 = vector.load %arg5[%c32, %c0_8] : memref<64x512xf32, #tpu.memory_space<vmem>>, vector<32x512xf32>
    %cst_9 = arith.constant 0.000000e+00 : f32
    %14 = vector.broadcast %cst_9 : f32 to vector<8x32xf32>
    %c0_10 = arith.constant 0 : index
    %c0_11 = arith.constant 0 : index
    %15 = vector.load %arg12[%c0_10, %c0_11] : memref<8x32xf32, #tpu.memory_space<vmem>>, vector<8x32xf32>
    tpu.vector_store %arg12[%c0_10, %c0_11], %14 {strides = array<i32>} : memref<8x32xf32, #tpu.memory_space<vmem>>, vector<8x32xf32>,
    %c0_12 = arith.constant 0 : index
    %c0_13 = arith.constant 0 : index
    %16 = vector.load %arg3[%c0_12, %c0_13] : memref<1x32xf32, #tpu.memory_space<vmem>>, vector<1x32xf32>
    %c0_14 = arith.constant 0 : index
    %c0_15 = arith.constant 0 : index
    %17 = vector.load %arg4[%c0_14, %c0_15] : memref<1x32xf32, #tpu.memory_space<vmem>>, vector<1x32xf32>
    %18 = vector.extract_strided_slice %12 {offsets = [0, 0], sizes = [1, 512], strides = [1, 1]} : vector<8x512xf32> to vector<1x512xf32>
    %cst_16 = arith.constant dense<0.000000e+00> : vector<1x512xf32>
    %19 = tpu.matmul %16, %13, %cst_16 {dimension_numbers = #tpu.dot_dimension_numbers<[1], [0], [0], [1], [0, 0, 1, 1], [], []>} : vector<1x32xf32>, vector<32x512xf32>, vector<1x512xf32> -> vector<1x512xf32>
    %20 = arith.addf %18, %19 : vector<1x512xf32>
    %21 = vector.extract_strided_slice %20 {offsets = [0, 0], sizes = [1, 32], strides = [1, 1]} : vector<1x512xf32> to vector<1x32xf32>
    %22 = arith.negf %21 : vector<1x32xf32>
    %23 = math.exp %22 : vector<1x32xf32>
    %cst_17 = arith.constant 1.000000e+00 : f32
    %24 = vector.broadcast %cst_17 : f32 to vector<1x32xf32>
    %25 = arith.addf %24, %23 : vector<1x32xf32>
    %26 = arith.divf %24, %25 : vector<1x32xf32>
    %27 = vector.extract_strided_slice %20 {offsets = [0, 128], sizes = [1, 32], strides = [1, 1]} : vector<1x512xf32> to vector<1x32xf32>
    %28 = arith.negf %27 : vector<1x32xf32>
    %29 = math.exp %28 : vector<1x32xf32>
    %cst_18 = arith.constant 1.000000e+00 : f32
    %30 = vector.broadcast %cst_18 : f32 to vector<1x32xf32>
    %31 = arith.addf %30, %29 : vector<1x32xf32>
    %32 = arith.divf %30, %31 : vector<1x32xf32>
    %33 = vector.extract_strided_slice %20 {offsets = [0, 256], sizes = [1, 32], strides = [1, 1]} : vector<1x512xf32> to vector<1x32xf32>
    %34 = math.tanh %33 : vector<1x32xf32>
    %35 = vector.extract_strided_slice %20 {offsets = [0, 384], sizes = [1, 32], strides = [1, 1]} : vector<1x512xf32> to vector<1x32xf32>
    %36 = arith.negf %35 : vector<1x32xf32>
    %37 = math.exp %36 : vector<1x32xf32>
    %cst_19 = arith.constant 1.000000e+00 : f32
    %38 = vector.broadcast %cst_19 : f32 to vector<1x32xf32>
    %39 = arith.addf %38, %37 : vector<1x32xf32>
    %40 = arith.divf %38, %39 : vector<1x32xf32>
    %41 = arith.mulf %32, %17 : vector<1x32xf32>
    %42 = arith.mulf %26, %34 : vector<1x32xf32>
    %43 = arith.addf %41, %42 : vector<1x32xf32>
    %44 = math.tanh %43 : vector<1x32xf32>
    %45 = arith.mulf %40, %44 : vector<1x32xf32>
    %c0_20 = arith.constant 0 : index
    %c0_21 = arith.constant 0 : index
    %46 = vector.load %arg12[%c0_20, %c0_21] : memref<8x32xf32, #tpu.memory_space<vmem>>, vector<1x32xf32>
    tpu.vector_store %arg12[%c0_20, %c0_21], %45 {strides = array<i32>} : memref<8x32xf32, #tpu.memory_space<vmem>>, vector<1x32xf32>,
    %c0_22 = arith.constant 0 : index
    %c0_23 = arith.constant 0 : index
    %47 = vector.load %arg12[%c0_22, %c0_23] : memref<8x32xf32, #tpu.memory_space<vmem>>, vector<8x32xf32>
    %c0_24 = arith.constant 0 : index
    %c0_25 = arith.constant 0 : index
    %48 = vector.load %arg7[%c0_24, %c0_25] : memref<32x128xf32, #tpu.memory_space<vmem>>, vector<32x128xf32>
    %cst_26 = arith.constant dense<0.000000e+00> : vector<8x128xf32>
    %49 = tpu.matmul %47, %48, %cst_26 {dimension_numbers = #tpu.dot_dimension_numbers<[1], [0], [0], [1], [0, 0, 1, 1], [], []>} : vector<8x32xf32>, vector<32x128xf32>, vector<8x128xf32> -> vector<8x128xf32>
    %c0_27 = arith.constant 0 : index
    %c0_28 = arith.constant 0 : index
    %50 = vector.load %arg8[%c0_27, %c0_28] : memref<1x128xf32, #tpu.memory_space<vmem>>, vector<1x128xf32>
    %51 = vector.broadcast %50 : vector<1x128xf32> to vector<8x128xf32>
    %52 = arith.addf %49, %51 : vector<8x128xf32>
    %cst_29 = arith.constant dense<0xFF800000> : vector<8xf32>
    %53 = vector.multi_reduction <maximumf>, %52, %cst_29 [1] : vector<8x128xf32> to vector<8xf32>
    %54 = vector.shape_cast %53 : vector<8xf32> to vector<8x1xf32>
    %55 = vector.broadcast %54 : vector<8x1xf32> to vector<8x128xf32>
    %56 = arith.subf %52, %55 : vector<8x128xf32>
    %57 = math.exp %56 : vector<8x128xf32>
    %cst_30 = arith.constant dense<0.000000e+00> : vector<8xf32>
    %58 = vector.multi_reduction <add>, %57, %cst_30 [1] : vector<8x128xf32> to vector<8xf32>
    %59 = vector.shape_cast %58 : vector<8xf32> to vector<8x1xf32>
    %60 = math.log %59 : vector<8x1xf32>
    %61 = vector.broadcast %60 : vector<8x1xf32> to vector<8x128xf32>
    %62 = arith.subf %56, %61 : vector<8x128xf32>
    %c0_31 = arith.constant 0 : index
    %c0_32 = arith.constant 0 : index
    %63 = vector.load %arg9[%c0_31, %c0_32] : memref<8x128xf32, #tpu.memory_space<vmem>>, vector<8x128xf32>
    tpu.vector_store %arg9[%c0_31, %c0_32], %62 {strides = array<i32>} : memref<8x128xf32, #tpu.memory_space<vmem>>, vector<8x128xf32>,
    %c0_33 = arith.constant 0 : index
    %c0_34 = arith.constant 0 : index
    %64 = vector.load %arg10[%c0_33, %c0_34] : memref<1x32xf32, #tpu.memory_space<vmem>>, vector<1x32xf32>
    tpu.vector_store %arg10[%c0_33, %c0_34], %45 {strides = array<i32>} : memref<1x32xf32, #tpu.memory_space<vmem>>, vector<1x32xf32>,
    %c0_35 = arith.constant 0 : index
    %c0_36 = arith.constant 0 : index
    %65 = vector.load %arg11[%c0_35, %c0_36] : memref<1x32xf32, #tpu.memory_space<vmem>>, vector<1x32xf32>
    tpu.vector_store %arg11[%c0_35, %c0_36], %43 {strides = array<i32>} : memref<1x32xf32, #tpu.memory_space<vmem>>, vector<1x32xf32>,
    return
  }
  func.func @transform_0(%arg0: i32) -> (i32, i32) {
    %c0_i32 = arith.constant 0 : i32
    %c0_i32_0 = arith.constant 0 : i32
    %c0_i32_1 = arith.constant 0 : i32
    return %c0_i32, %c0_i32_0 : i32, i32
  }
  func.func @transform_1(%arg0: i32) -> (i32, i32) {
    %c0_i32 = arith.constant 0 : i32
    %c0_i32_0 = arith.constant 0 : i32
    %c0_i32_1 = arith.constant 0 : i32
    return %c0_i32, %c0_i32_0 : i32, i32
  }
  func.func @transform_2(%arg0: i32) -> (i32, i32) {
    %c0_i32 = arith.constant 0 : i32
    %c0_i32_0 = arith.constant 0 : i32
    %c0_i32_1 = arith.constant 0 : i32
    return %c0_i32, %c0_i32_0 : i32, i32
  }
  func.func @transform_3(%arg0: i32) -> (i32, i32) {
    %c0_i32 = arith.constant 0 : i32
    %c0_i32_0 = arith.constant 0 : i32
    %c0_i32_1 = arith.constant 0 : i32
    return %c0_i32, %c0_i32_0 : i32, i32
  }
  func.func @transform_4(%arg0: i32) -> (i32, i32) {
    %c0_i32 = arith.constant 0 : i32
    %c0_i32_0 = arith.constant 0 : i32
    %c0_i32_1 = arith.constant 0 : i32
    return %c0_i32, %c0_i32_0 : i32, i32
  }
  func.func @transform_5(%arg0: i32) -> (i32, i32) {
    %c0_i32 = arith.constant 0 : i32
    %c0_i32_0 = arith.constant 0 : i32
    %c0_i32_1 = arith.constant 0 : i32
    return %c0_i32, %c0_i32_0 : i32, i32
  }
  func.func @transform_6(%arg0: i32) -> (i32, i32) {
    %c0_i32 = arith.constant 0 : i32
    %c0_i32_0 = arith.constant 0 : i32
    %c0_i32_1 = arith.constant 0 : i32
    return %c0_i32, %c0_i32_0 : i32, i32
  }
  func.func @transform_7(%arg0: i32) -> (i32, i32) {
    %c0_i32 = arith.constant 0 : i32
    %c0_i32_0 = arith.constant 0 : i32
    %c0_i32_1 = arith.constant 0 : i32
    return %c0_i32, %c0_i32_0 : i32, i32
  }
  func.func @transform_8(%arg0: i32) -> (i32, i32) {
    %c0_i32 = arith.constant 0 : i32
    %c0_i32_0 = arith.constant 0 : i32
    %c0_i32_1 = arith.constant 0 : i32
    return %c0_i32, %c0_i32_0 : i32, i32
  }
  func.func @transform_9(%arg0: i32) -> (i32, i32) {
    %c0_i32 = arith.constant 0 : i32
    %c0_i32_0 = arith.constant 0 : i32
    %c0_i32_1 = arith.constant 0 : i32
    return %c0_i32, %c0_i32_0 : i32, i32
  }
  func.func @transform_10(%arg0: i32) -> (i32, i32) {
    %c0_i32 = arith.constant 0 : i32
    %c0_i32_0 = arith.constant 0 : i32
    %c0_i32_1 = arith.constant 0 : i32
    return %c0_i32, %c0_i32_0 : i32, i32
  }
}

</mosaic_0001>

<bundles_post_ra>
// kernel: decoder_decode.1
= control target key start
LH: loop header
LB: loop body
LE: loop exit
PB: predicated region body
PF: predicated region fallthrough
CT: control target
= control target key end

     0   :  { %16 = vsyncpa [#allocation4], 0  ;;  %s713_s0 = inlined_call_operand.vmem [shape: s32[8,1], index: 0, kind: input, shape index: {}]   ;;  %s714_s1 = inlined_call_operand.vmem [shape: f32[64,32], index: 1, kind: input, shape index: {}]   ;;  %s715_s2 = inlined_call_operand.vmem [shape: f32[1,32], index: 2, kind: input, shape index: {}]   ;;  %s716_s3 = inlined_call_operand.vmem [shape: f32[1,32], index: 3, kind: input, shape index: {}]   ;;  %s717_s4 = inlined_call_operand.hbm [shape: f32[64,512], index: 4, kind: input, shape index: {}]   ;;  %s718_s5 = inlined_call_operand.vmem [shape: f32[1,512], index: 5, kind: input, shape index: {}]   ;;  %s719_s6 = inlined_call_operand.vmem [shape: f32[32,128], index: 6, kind: input, shape index: {}]   ;;  %s720_s7 = inlined_call_operand.vmem [shape: f32[1,128], index: 7, kind: input, shape index: {}]   ;;  %s721_s8 = inlined_call_operand.vmem [shape: f32[8,128], index: 8, kind: output, shape index: {0}]   ;;  %s722_s9 = inlined_call_operand.hbm [shape: f32[1,32], index: 9, kind: output, shape index: {1}]   ;;  %s723_s10 = inlined_call_operand.hbm [shape: f32[1,32], index: 10, kind: output, shape index: {2}]  }
   0x1   :  { %17 = vsyncpa [#allocation5], 0 }
   0x2   :  { %18 = vsyncpa [#allocation8], 0  ;;  %s31_s15 = sshll.u32 %s717_s4, 4  ;;  %s575_s16 = smov [#allocation3]   ;;  %s32_s15 = int_to_ptr.hbm [resolvable:$true] %s31_s15 }
   0x3   :  { %s33_s17 = sshll.u32 %s575_s16, 4  ;;  %s576_s18 = smov 512   ;;  %s34_s17 = int_to_ptr.vmem [resolvable:$true] %s33_s17 }
   0x4   :  { %s577_s19 = smov 32  }
   0x5   :  { %39 = dma.hbm_to_vmem [thread:$0]  %s32_s15, 4096, %s34_s17, [#allocation4], %s576_s18, %s576_s18, %s577_s19  }
   0x6   :  { %569 = dma.done.wait [#allocation4], 4096  }
   0x7   :  { %570 = vsyncadd [#allocation4], 4294963200  ;;  %vm117_vm0 = vcmask 261120   ;;  %v578_v0 = vmov 0   ;;  %v579_v1 = vmov 0.0   ;;  %v50_v2 = vld [vmem:[%s713_s0] sm:$0xff]  ;;  %v51_v20 = vlaneseq }
   0x8   :  { %475 = vset.pattern.permute.xlu0 %v578_v0  ;;  %217 = vst.msk [vmem:[#allocation2] sm:$0xff] %vm117_vm0, %v579_v1  ;;  %v66_v3 = vld [vmem:[%s714_s1 + $0x38] sm:$0xff]  ;;  %v65_v4 = vld [vmem:[%s714_s1 + $0x30] sm:$0xff]  ;;  %v64_v5 = vld [vmem:[%s714_s1 + $0x28] sm:$0xff]  ;;  %vm67_vm1 = vcmask 523264   ;;  %vm370_vm11 = vcmask 253952  }
   0x9   :  { %54 = vperm.xlu0 %475, %v50_v2   ;;  %79 = vmatpush.msra.mxu0 %v66_v3  ;;  %v63_v6 = vld [vmem:[%s714_s1 + $0x20] sm:$0xff]  ;;  %v62_v7 = vld [vmem:[%s714_s1 + $0x18] sm:$0xff]  ;;  %v61_v8 = vld [vmem:[%s714_s1 + $0x10] sm:$0xff]  ;;  %v52_v21 = vand.u32 127, %v51_v20  ;;  %s580_s26 = smov [#allocation6]   ;;  %s426_s29 = sshll.u32 %s722_s9, 4  ;;  %s427_s29 = int_to_ptr.hbm [resolvable:$true] %s426_s29 }
   0xa   :  { %v60_v9 = vld [vmem:[%s714_s1 + $0x8] sm:$0xff]  ;;  %v59_v10 = vld [vmem:[%s714_s1] sm:$0xff]  ;;  %v104_v12 = vld [vmem:[#allocation3 + $0x68] sm:$0xff]  ;;  %s424_s27 = sshll.u32 %s580_s26, 4  ;;  %s581_s30 = smov [#allocation7]   ;;  %s425_s27 = int_to_ptr.vmem [resolvable:$true] %s424_s27 }
   0xb   :  { %80 = vmatpush.msra.mxu0 %v65_v4  ;;  %v103_v11 = vld [vmem:[#allocation3 + $0x60] sm:$0xff]  ;;  %v105_v13 = vld [vmem:[#allocation3 + $0x70] sm:$0xff]  ;;  %153 = vmatpush.msra.mxu2 %v104_v12  ;;  %v100_v15 = vld [vmem:[#allocation3 + $0x48] sm:$0xff]  ;;  %s437_s13 = sshll.u32 %s723_s10, 4  ;;  %s438_s13 = int_to_ptr.hbm [resolvable:$true] %s437_s13 }
   0xc   :  { %133 = vmatpush.msra.mxu1 %v103_v11  ;;  %v99_v14 = vld [vmem:[#allocation3 + $0x40] sm:$0xff]  ;;  %v101_v16 = vld [vmem:[#allocation3 + $0x50] sm:$0xff]  ;;  %173 = vmatpush.msra.mxu3 %v105_v13  ;;  %v96_v18 = vld [vmem:[#allocation3 + $0x28] sm:$0xff] }
   0xd   :  { %81 = vmatpush.msra.mxu0 %v64_v5  ;;  %v95_v17 = vld [vmem:[#allocation3 + $0x20] sm:$0xff]  ;;  %154 = vmatpush.msra.mxu2 %v100_v15  ;;  %v97_v19 = vld [vmem:[#allocation3 + $0x30] sm:$0xff]  ;;  %v92_v25 = vld [vmem:[#allocation3 + $0x8] sm:$0xff] }
   0xe   :  { %134 = vmatpush.msra.mxu1 %v99_v14  ;;  %174 = vmatpush.msra.mxu3 %v101_v16  ;;  %v91_v24 = vld [vmem:[#allocation3] sm:$0xff]  ;;  %v93_v26 = vld [vmem:[#allocation3 + $0x10] sm:$0xff]  ;;  %v214_v28 = vld [vmem:[#allocation3 + $0xe8] sm:$0xff] }
   0xf   :  { %82 = vmatpush.msra.mxu0 %v63_v6  ;;  %155 = vmatpush.msra.mxu2 %v96_v18  ;;  %v213_v27 = vld [vmem:[#allocation3 + $0xe0] sm:$0xff]  ;;  %v106_v29 = vld [vmem:[#allocation3 + $0x78] sm:$0xff]  ;;  %v215_v30 = vld [vmem:[#allocation3 + $0xf0] sm:$0xff] }
  0x10   :  { %135 = vmatpush.msra.mxu1 %v95_v17  ;;  %175 = vmatpush.msra.mxu3 %v97_v19  ;;  %v209_v31 = vld [vmem:[#allocation3 + $0xc0] sm:$0xff]  ;;  %v210_v32 = vld [vmem:[#allocation3 + $0xc8] sm:$0xff]  ;;  %v102_v33 = vld [vmem:[#allocation3 + $0x58] sm:$0xff] }
  0x11   :  { %83 = vmatpush.msra.mxu0 %v62_v7  ;;  %156 = vmatpush.msra.mxu2 %v92_v25  ;;  %v211_v34 = vld [vmem:[#allocation3 + $0xd0] sm:$0xff]  ;;  %v205_v35 = vld [vmem:[#allocation3 + $0xa0] sm:$0xff]  ;;  %v206_v36 = vld [vmem:[#allocation3 + $0xa8] sm:$0xff] }
  0x12   :  { %136 = vmatpush.msra.mxu1 %v91_v24  ;;  %176 = vmatpush.msra.mxu3 %v93_v26  ;;  %v98_v37 = vld [vmem:[#allocation3 + $0x38] sm:$0xff]  ;;  %v207_v38 = vld [vmem:[#allocation3 + $0xb0] sm:$0xff]  ;;  %v201_v39 = vld [vmem:[#allocation3 + $0x80] sm:$0xff] }
  0x13   :  { %84 = vmatpush.msra.mxu0 %v61_v8  ;;  %235 = vmatpush.msrb.mxu2 %v213_v27  ;;  %v202_v40 = vld [vmem:[#allocation3 + $0x88] sm:$0xff]  ;;  %v94_v41 = vld [vmem:[#allocation3 + $0x18] sm:$0xff]  ;;  %v203_v42 = vld [vmem:[#allocation3 + $0x90] sm:$0xff] }
  0x14   :  { %255 = vmatpush.msrb.mxu3 %v214_v28  ;;  %193 = vmatpush.msrb.mxu1 %v106_v29  ;;  %v218_v43 = vld [vmem:[%s715_s2] sm:$0x1]  ;;  %v376_v11 = vld [vmem:[%s719_s6 + $0x18] sm:$0xff]  ;;  %v375_v12 = vld [vmem:[%s719_s6 + $0x10] sm:$0xff] }
  0x15   :  { %85 = vmatpush.msra.mxu0 %v60_v9  ;;  %236 = vmatpush.msrb.mxu2 %v209_v31  ;;  %v216_v44 = vld [vmem:[#allocation3 + $0xf8] sm:$0xff]  ;;  %v374_v15 = vld [vmem:[%s719_s6 + $0x8] sm:$0xff] }
  0x16   :  { %256 = vmatpush.msrb.mxu3 %v210_v32  ;;  %194 = vmatpush.msrb.mxu1 %v102_v33  ;;  %v212_v46 = vld [vmem:[#allocation3 + $0xd8] sm:$0xff] }
  0x17   :  { %86 = vmatpush.msra.mxu0 %v59_v10  ;;  %237 = vmatpush.msrb.mxu2 %v205_v35  ;;  %v208_v47 = vld [vmem:[#allocation3 + $0xb8] sm:$0xff] }
  0x18   :  { %257 = vmatpush.msrb.mxu3 %v206_v36  ;;  %195 = vmatpush.msrb.mxu1 %v98_v37  ;;  %v204_v48 = vld [vmem:[#allocation3 + $0x98] sm:$0xff] }
  0x19   :  { %275 = vmatpush.msrb.mxu0 %v215_v30  ;;  %238 = vmatpush.msrb.mxu2 %v201_v39  ;;  %v107_v50 = vld [vmem:[%s718_s5] sm:$0xf] }
  0x1a   :  { %258 = vmatpush.msrb.mxu3 %v202_v40  ;;  %196 = vmatpush.msrb.mxu1 %v94_v41  ;;  %v109_v54 = vperm.slane %v107_v50, 0  ;;  %v110_v55 = vperm.slane %v107_v50, 1  ;;  %v112_v56 = vperm.slane %v107_v50, 3  ;;  %v111_v7 = vperm.slane %v107_v50, 2  ;;  %v373_v17 = vld [vmem:[%s719_s6] sm:$0xff] }
  0x1b   :  { %276 = vmatpush.msrb.mxu0 %v211_v34 }
  0x1d   :  { %277 = vmatpush.msrb.mxu0 %v207_v38  ;;  %v219_v38 = vld [vmem:[%s716_s3] sm:$0x1] }
  0x1f   :  { %278 = vmatpush.msrb.mxu0 %v203_v42 }
  0x7b   :  { %v55_v22 = vpop.permute.xlu0 %54 }
  0x7c   :  { %vm56_vm2 = vcmp.eq.s32.totalorder %v55_v22, %v52_v21 }
  0x7d   :  { %v454_v23 = vsel %vm56_vm2, 1.0, %v579_v1 }
  0x7e   :  { %455 = vmatmul.msk.f32.vlgmr.msra.gmra.mxu0 %vm67_vm1, %v454_v23 }
  0x86   :  { %462 = vmatmul.msk.f32.vlgmr.msrb.gmra.mxu0 %vm117_vm0, %v218_v43 }
  0xfb   :  { %v88_v45 = vpop.f32.mrf.mxu0 }
  0xfc   :  { %456 = vmatmul.msk.f32.vlgmr.msra.gmra.mxu1 %vm117_vm0, %v88_v45  ;;  %457 = vmatmul.msk.f32.vlgmr.msra.gmra.mxu2 %vm117_vm0, %v88_v45 }
  0xfd   :  { %458 = vmatmul.msk.f32.vlgmr.msra.gmra.mxu3 %vm117_vm0, %v88_v45  ;;  %295 = vmatpush.msra.mxu1 %v216_v44 }
  0xfe   :  { %396 = vmatpush.msra.mxu2 %v376_v11 }
  0xff   :  { %296 = vmatpush.msra.mxu1 %v212_v46 }
 0x100   :  { %397 = vmatpush.msra.mxu2 %v375_v12 }
 0x101   :  { %297 = vmatpush.msra.mxu1 %v208_v47 }
 0x102   :  { %398 = vmatpush.msra.mxu2 %v374_v15 }
 0x103   :  { %298 = vmatpush.msra.mxu1 %v204_v48  ;;  %v280_v16 = vpop.f32.mrf.mxu0 }
 0x104   :  { %459 = vmatmul.msk.f32.vlgmr.msrb.gmra.mxu1 %vm117_vm0, %v88_v45  ;;  %460 = vmatmul.msk.f32.vlgmr.msrb.gmra.mxu2 %vm117_vm0, %v218_v43 }
 0x105   :  { %461 = vmatmul.msk.f32.vlgmr.msrb.gmra.mxu3 %vm117_vm0, %v218_v43  ;;  %399 = vmatpush.msra.mxu2 %v373_v17 }
 0x10c   :  { %463 = vmatmul.msk.f32.vlgmr.msra.gmra.mxu1 %vm117_vm0, %v218_v43 }
 0x179   :  { %v138_v49 = vpop.f32.mrf.mxu1 }
 0x17a   :  { %v139_v57 = vadd.f32 %v138_v49, %v109_v54 }
 0x17f   :  { %v158_v51 = vpop.f32.mrf.mxu2 }
 0x180   :  { %v178_v52 = vpop.f32.mrf.mxu3  ;;  %v159_v58 = vadd.f32 %v158_v51, %v110_v55 }
 0x181   :  { %v198_v53 = vpop.f32.mrf.mxu1  ;;  %v179_v13 = vadd.f32 %v178_v52, %v111_v7 }
 0x182   :  { %v199_v60 = vadd.f32 %v198_v53, %v112_v56 }
 0x183   :  { %v305_v19 = vadd.f32 %v280_v16, %v179_v13 }
 0x187   :  { %v240_v59 = vpop.f32.mrf.mxu2 }
 0x188   :  { %v303_v61 = vadd.f32 %v240_v59, %v139_v57  ;;  %v260_v62 = vpop.f32.mrf.mxu3  ;;  %v476_v57 = vld [vmem:[%s720_s7] ss:$0 sm:$0xff]  ;;  %s435_s7 = sshll.u32 %s581_s30, 4  ;;  %s436_s7 = int_to_ptr.vmem [resolvable:$true] %s435_s7 }
 0x189   :  { %v304_v63 = vadd.f32 %v260_v62, %v159_v58  ;;  %v300_v0 = vpop.f32.mrf.mxu1 }
 0x18a   :  { %v464_v1 = vmul.f32 -1.442695, %v303_v61  ;;  %v306_v2 = vadd.f32 %v300_v0, %v199_v60 }
 0x18b   :  { %v465_v3 = vmul.f32 -1.442695, %v304_v63 }
 0x18c   :  { %477 = vpow2.f32 %v464_v1  ;;  %v466_v4 = vmul.f32 -1.442695, %v306_v2 }
 0x18d   :  { %479 = vpow2.f32 %v465_v3 }
 0x18e   :  { %481 = vpow2.f32 %v466_v4 }
 0x192   :  { %v478_v5 = vpop.eup %477 }
 0x193   :  { %v480_v6 = vpop.eup %479  ;;  %v310_v8 = vadd.f32 1.0, %v478_v5 }
 0x194   :  { %v482_v9 = vpop.eup %481  ;;  %v329_v10 = vadd.f32 1.0, %v480_v6 }
 0x195   :  { %483 = vrcp.f32 %v310_v8  ;;  %v349_v14 = vadd.f32 1.0, %v482_v9  ;;  %v320_v25 = vand.u32 2147483647, %v310_v8  ;;  %v322_v26 = vand.u32 2147483648, %v310_v8 }
 0x196   :  { %485 = vrcp.f32 %v329_v10  ;;  %v341_v29 = vand.u32 2147483648, %v329_v10  ;;  %v339_v32 = vand.u32 2147483647, %v329_v10  ;;  %vm316_vm5 = vweird.f32 %v310_v8 }
 0x197   :  { %487 = vrcp.f32 %v349_v14  ;;  %v323_v35 = vor.u32 1.1754944e-38, %v322_v26  ;;  %vm335_vm7 = vweird.f32 %v329_v10  ;;  %vm321_vm8 = vcmp.eq.f32.partialorder %v320_v25, 8.507059e+37 }
 0x198   :  { %489 = vtanh.f32 %v305_v19  ;;  %v342_v39 = vor.u32 1.1754944e-38, %v341_v29  ;;  %vm340_vm10 = vcmp.eq.f32.partialorder %v339_v32, 8.507059e+37  ;;  %v361_v49 = vand.u32 2147483648, %v349_v14 }
 0x199   :  { %vm355_vm13 = vweird.f32 %v349_v14  ;;  %v359_v50 = vand.u32 2147483647, %v349_v14 }
 0x19a   :  { %v362_v52 = vor.u32 1.1754944e-38, %v361_v49 }
 0x19b   :  { %v484_v18 = vpop.eup %483  ;;  %vm360_vm15 = vcmp.eq.f32.partialorder %v359_v50, 8.507059e+37 }
 0x19c   :  { %v486_v20 = vpop.eup %485  ;;  %v312_v21 = vmul.f32 %v484_v18, %v310_v8  ;;  %vm317_vm3 = vweird.f32 %v484_v18 }
 0x19d   :  { %v331_v22 = vmul.f32 %v486_v20, %v329_v10  ;;  %v488_v24 = vpop.eup %487  ;;  %vm336_vm4 = vweird.f32 %v486_v20  ;;  %vm318_vm6 = vmor %vm316_vm5, %vm317_vm3 }
 0x19e   :  { %v313_v23 = vsub.f32 1.0, %v312_v21  ;;  %v351_v30 = vmul.f32 %v488_v24, %v349_v14  ;;  %vm337_vm9 = vmor %vm335_vm7, %vm336_vm4  ;;  %v490_v40 = vpop.eup %489  ;;  %vm356_vm12 = vweird.f32 %v488_v24 }
 0x19f   :  { %v332_v27 = vsub.f32 1.0, %v331_v22  ;;  %vm357_vm14 = vmor %vm355_vm13, %vm356_vm12 }
 0x1a0   :  { %v314_v28 = vmul.f32 %v484_v18, %v313_v23  ;;  %v352_v34 = vsub.f32 1.0, %v351_v30 }
 0x1a1   :  { %v333_v31 = vmul.f32 %v486_v20, %v332_v27 }
 0x1a2   :  { %v315_v33 = vadd.f32 %v484_v18, %v314_v28  ;;  %v353_v45 = vmul.f32 %v488_v24, %v352_v34 }
 0x1a3   :  { %v334_v36 = vadd.f32 %v486_v20, %v333_v31 }
 0x1a4   :  { %v319_v37 = vsel %vm318_vm6, %v484_v18, %v315_v33  ;;  %v354_v48 = vadd.f32 %v488_v24, %v353_v45 }
 0x1a5   :  { %v324_v41 = vsel %vm321_vm8, %v323_v35, %v319_v37  ;;  %v338_v42 = vsel %vm337_vm9, %v486_v20, %v334_v36 }
 0x1a6   :  { %v366_v43 = vmul.f32 %v490_v40, %v324_v41  ;;  %v343_v44 = vsel %vm340_vm10, %v342_v39, %v338_v42  ;;  %v358_v51 = vsel %vm357_vm14, %v488_v24, %v354_v48 }
 0x1a7   :  { %v365_v46 = vmul.f32 %v343_v44, %v219_v38  ;;  %v363_v54 = vsel %vm360_vm15, %v362_v52, %v358_v51 }
 0x1a9   :  { %v367_v47 = vadd.f32 %v366_v43, %v365_v46 }
 0x1ab   :  { %491 = vtanh.f32 %v367_v47  ;;  %416 = vst.msk [vmem:[#allocation7] sm:$0x1] %vm370_vm11, %v367_v47 }
 0x1ac   :  { %440 = dma.vmem_to_hbm [thread:$0]  %s436_s7, 16, %s438_s13, [#allocation8]  }
 0x1b1   :  { %v492_v53 = vpop.eup %491 }
 0x1b2   :  { %v369_v55 = vmul.f32 %v492_v53, %v363_v54 }
 0x1b4   :  { %371 = vst.msk [vmem:[#allocation2] sm:$0x1] %vm370_vm11, %v369_v55 }
 0x1b5   :  { %415 = vst.msk [vmem:[#allocation6] sm:$0x1] %vm370_vm11, %v369_v55 }
 0x1b6   :  { %429 = dma.vmem_to_hbm [thread:$0]  %s425_s27, 16, %s427_s29, [#allocation5]  }
 0x1bb   :  { %v372_v56 = vld [vmem:[#allocation2] sm:$0xff] }
 0x1bc   :  { %467 = vmatmul.msk.f32.vlgmr.msra.gmra.mxu2 %vm117_vm0, %v372_v56 }
 0x23f   :  { %v401_v58 = vpop.f32.mrf.mxu2 }
 0x240   :  { %v402_v59 = vadd.f32 %v476_v57, %v401_v58 }
 0x242   :  { %404 = vmax.xlane.f32.xlu0 %v402_v59 }
 0x2b5   :  { %v405_v60 = vpop.xlane.xlu0 %404 }
 0x2b6   :  { %v406_v61 = vsub.f32 %v402_v59, %v405_v60 }
 0x2b8   :  { %v407_v62 = vmul.f32 1.442695, %v406_v61 }
 0x2ba   :  { %493 = vpow2.f32 %v407_v62 }
 0x2c0   :  { %v494_v63 = vpop.eup %493 }
 0x2c1   :  { %409 = vadd.xlane.f32.xlu1 %v494_v63 }
 0x334   :  { %v410_v0 = vpop.xlane.xlu1 %409 }
 0x335   :  { %495 = vlog2.f32 %v410_v0 }
 0x33b   :  { %v496_v1 = vpop.eup %495 }
 0x33c   :  { %v412_v2 = vmul.f32 0.6931472, %v496_v1 }
 0x33e   :  { %v413_v3 = vsub.f32 %v406_v61, %v412_v2 }
 0x340   :  { %414 = vst [vmem:[%s721_s8] sm:$0xff] %v413_v3 }
 0x341   :  { %571 = dma.done.wait [#allocation5], 16  }
 0x342   :  { %572 = vsyncadd [#allocation5], 4294967280 }
 0x343   :  { %573 = dma.done.wait [#allocation8], 16  }
 0x344   :  { %574 = vsyncadd [#allocation8], 4294967280 }
 0x345   :  { %451 = vsyncpa [#allocation4], 1 }
 0x346   :  { %452 = vsyncpa [#allocation5], 1 }
 0x347   :  { %453 = vsyncpa [#allocation8], 1 }

</bundles_post_ra>
